<compile_context>
chip_gen: v7x
topology: tpu7x:2x2x1
jax: 0.10.0
libtpu: 0.0.40
codegen_flags: <defaults>
</compile_context>

<pallas_src>
import math

import jax
import jax.numpy as jnp
from jax.experimental import pallas as pl
from jax.experimental.pallas import tpu as pltpu


def _round_up(x, m):
    return (x + m - 1) // m * m


# ---------------------------------------------------------------------------
# Fused kernel: output = adj @ (X @ W) + bias   (or ((adj @ X) @ W) + bias)
# ---------------------------------------------------------------------------
def _make_gcn_kernel(aggregate_first, compute_dtype):
    """Grid = (row blocks, walk steps over nonzero adj k-blocks).

    Scalar-prefetch refs:
      ids_ref : flat (nb_i * nb_k,) int32 — adjacency k-block visited at step
                (i, k); steps past the per-row count repeat the last valid id
                so their DMAs are elided.
      cnt_ref : (nb_i,) int32 — number of nonzero adj blocks in row block i.
    """

    def kernel(ids_ref, cnt_ref, adj_ref, x_ref, w_ref, b_ref, o_ref, acc_ref):
        del ids_ref  # consumed by the index_maps only
        i = pl.program_id(0)
        k = pl.program_id(1)

        @pl.when(k == 0)
        def _init():
            acc_ref[...] = jnp.zeros_like(acc_ref)

        @pl.when(k < cnt_ref[i])
        def _accumulate():
            if aggregate_first:
                # acc(tm, F_in) += adj(tm, tk) @ x_k(tk, F_in)
                acc_ref[...] += jnp.dot(
                    adj_ref[...], x_ref[...],
                    preferred_element_type=jnp.float32,
                )
            else:
                # Support slice recomputed on the fly (never hits HBM):
                #   s(tk, F_out) = x_k @ W ;  acc(tm, F_out) += adj @ s
                s = jnp.dot(
                    x_ref[...], w_ref[...],
                    preferred_element_type=jnp.float32,
                )
                acc_ref[...] += jnp.dot(
                    adj_ref[...], s.astype(compute_dtype),
                    preferred_element_type=jnp.float32,
                )

        @pl.when(k == pl.num_programs(1) - 1)
        def _finalize():
            if aggregate_first:
                out = jnp.dot(
                    acc_ref[...], w_ref[...].astype(jnp.float32),
                    preferred_element_type=jnp.float32,
                )
            else:
                out = acc_ref[...]
            # Bias add stays f32 on the VPU, once per row tile.
            o_ref[...] = (out + b_ref[...]).astype(o_ref.dtype)

    return kernel


# ---------------------------------------------------------------------------
# Block-sparse walk metadata (static shapes -> jit compatible)
# ---------------------------------------------------------------------------
def _block_walk(adj_pad, tm, tk):
    """Per-row-block list of nonzero (tm, tk) adjacency block indices + count."""
    n_pad = adj_pad.shape[0]
    nb_i, nb_k = n_pad // tm, n_pad // tk
    blocks = adj_pad.reshape(nb_i, tm, nb_k, tk)
    mask = jnp.any(blocks != 0.0, axis=(1, 3))            # (nb_i, nb_k)
    counts = jnp.sum(mask, axis=1).astype(jnp.int32)      # (nb_i,)
    # Stable argsort puts nonzero block ids first, in ascending order.
    order = jnp.argsort(jnp.logical_not(mask).astype(jnp.int32), axis=1)
    order = order.astype(jnp.int32)
    last = jnp.take_along_axis(order, jnp.maximum(counts - 1, 0)[:, None], axis=1)
    j = jnp.arange(nb_k, dtype=jnp.int32)[None, :]
    # Padded steps repeat the last visited block -> pipeline elides their DMA.
    ids = jnp.where(j < counts[:, None], order, last).astype(jnp.int32)
    return ids.reshape(-1), counts


# ---------------------------------------------------------------------------
# Wrapper
# ---------------------------------------------------------------------------
def graph_convolution(x, weight, adj, bias=None, *, use_bf16=True, tm=None, tk=None):
    """Pallas GCN layer forward.

    x:      (N, F_in)     float32 node features
    weight: (F_in, F_out) float32
    adj:    (N, N)        dense adjacency (row-normalized), float32
    bias:   (F_out,) or None
    returns (N, F_out)    float32
    """
    n, f_in = x.shape
    f_in_w, f_out = weight.shape
    assert f_in == f_in_w
    assert adj.shape == (n, n)

    compute_dtype = jnp.bfloat16 if use_bf16 else jnp.float32
    # Association: carry min(F_in, F_out) features through the N^2 contraction.
    aggregate_first = f_out > f_in

    # ---- tile selection; pad N to the tile so the fast config is guaranteed.
    #      (Padded blocks are all-zero and skipped by the sparse walk.)
    n_pad0 = _round_up(n, 128)
    if tm is None:
        tm = n_pad0 if n_pad0 <= 512 else 512
    if tk is None:
        if n_pad0 <= 512:
            tk = n_pad0
        else:
            tk = 1024 if _round_up(n, 512) % 1024 == 0 else 512
    assert tm % 128 == 0 and tk % 128 == 0
    n_pad = _round_up(n, math.lcm(tm, tk))
    f_out_pad = _round_up(f_out, 128)
    nb_i, nb_k = n_pad // tm, n_pad // tk

    # ---- zero padding (semantics preserving; sliced off at the end) --------
    adj_p = jnp.pad(adj, ((0, n_pad - n), (0, n_pad - n)))
    x_p = jnp.pad(x, ((0, n_pad - n), (0, 0))).astype(compute_dtype)
    w_p = jnp.pad(weight, ((0, 0), (0, f_out_pad - f_out))).astype(compute_dtype)
    if bias is None:
        b_p = jnp.zeros((1, f_out_pad), dtype=jnp.float32)
    else:
        b_p = jnp.pad(
            bias.reshape(1, f_out).astype(jnp.float32),
            ((0, 0), (0, f_out_pad - f_out)),
        )

    # ---- block-sparse walk metadata (computed on f32 adj, before cast) -----
    ids, counts = _block_walk(adj_p, tm, tk)
    adj_p = adj_p.astype(compute_dtype)

    acc_shape = (tm, f_in) if aggregate_first else (tm, f_out_pad)

    grid_spec = pltpu.PrefetchScalarGridSpec(
        num_scalar_prefetch=2,
        grid=(nb_i, nb_k),
        in_specs=[
            # adjacency block for this walk step
            pl.BlockSpec((tm, tk),
                         lambda i, k, ids, cnts: (i, ids[i * nb_k + k])),
            # matching X k-slice (full feature width)
            pl.BlockSpec((tk, f_in),
                         lambda i, k, ids, cnts: (ids[i * nb_k + k], 0)),
            # weight: VMEM resident (same block every step)
            pl.BlockSpec((f_in, f_out_pad),
                         lambda i, k, ids, cnts: (0, 0)),
            # bias: VMEM resident
            pl.BlockSpec((1, f_out_pad),
                         lambda i, k, ids, cnts: (0, 0)),
        ],
        out_specs=pl.BlockSpec((tm, f_out_pad),
                               lambda i, k, ids, cnts: (i, 0)),
        scratch_shapes=[pltpu.VMEM(acc_shape, jnp.float32)],
    )

    out_pad = pl.pallas_call(
        _make_gcn_kernel(aggregate_first, compute_dtype),
        out_shape=jax.ShapeDtypeStruct((n_pad, f_out_pad), jnp.float32),
        grid_spec=grid_spec,
        compiler_params=pltpu.CompilerParams(
            # Row axis shards across v7x's two TensorCores; the walk/reduction
            # axis carries the accumulator and stays "arbitrary" (and last).
            dimension_semantics=("parallel", "arbitrary")
        ),
    )(ids, counts, adj_p, x_p, w_p, b_p)

    return out_pad[:n, :f_out]


# ---------------------------------------------------------------------------
# Demo / self-test
# ---------------------------------------------------------------------------
if __name__ == "__main__":
    def make_case(key, n, f_in, f_out, density=0.10, bandwidth=None):
        kx, ka, kw, kb = jax.random.split(key, 4)
        x = jax.random.normal(kx, (n, f_in), dtype=jnp.float32)
        edges = (jax.random.uniform(ka, (n, n)) < density).astype(jnp.float32)
        if bandwidth is not None:  # banded graph -> some all-zero adj blocks
            idx = jnp.arange(n)
            band = (jnp.abs(idx[:, None] - idx[None, :]) < bandwidth)
            edges = edges * band.astype(jnp.float32)
        adj = edges + jnp.eye(n, dtype=jnp.float32)
        adj = adj / jnp.sum(adj, axis=1, keepdims=True)      # row-normalized
        # reset_parameters(): uniform(-stdv, stdv), stdv = 1/sqrt(out_features)
        stdv = 1.0 / math.sqrt(f_out)
        w = jax.random.uniform(kw, (f_in, f_out), minval=-stdv, maxval=stdv,
                               dtype=jnp.float32)
        b = jax.random.uniform(kb, (f_out,), minval=-stdv, maxval=stdv,
                               dtype=jnp.float32)
        return x, w, adj, b

    key = jax.random.PRNGKey(0)
    k1, k2, k3 = jax.random.split(key, 3)

    # Small, module-consistent shapes (N nodes, in_features -> out_features).
    cases = [
        # single-block path, F_out < F_in  -> adj @ (X @ W) association
        (make_case(k1, 64, 32, 16), {}),
        # multi-block block-sparse walk (banded adjacency -> skipped blocks)
        (make_case(k2, 300, 32, 16, bandwidth=96), {"tm": 128, "tk": 128}),
        # F_out > F_in  -> (adj @ X) @ W association
        (make_case(k3, 300, 16, 48, bandwidth=96), {"tm": 128, "tk": 128}),
    ]

    for (x, w, adj, b), tiles in cases:
        ref = adj @ (x @ w) + b[None, :]

        out_f32 = jax.block_until_ready(
            graph_convolution(x, w, adj, b, use_bf16=False, **tiles))
        assert out_f32.shape == ref.shape
        err = float(jnp.max(jnp.abs(out_f32 - ref)))
        assert jnp.allclose(out_f32, ref, atol=2e-3, rtol=2e-3), err

        out_bf16 = jax.block_until_ready(
            graph_convolution(x, w, adj, b, use_bf16=True, **tiles))
        err = float(jnp.max(jnp.abs(out_bf16 - ref)))
        assert jnp.allclose(out_bf16, ref, atol=5e-2, rtol=5e-2), err

    print("KERNEL_OK")
</pallas_src>

<mosaic_0001>
module attributes {stable_mosaic.version = 11 : i64} {
  func.func @kernel(%arg0: i32, %arg1: i32, %arg2: memref<1xi32, #tpu.memory_space<smem>>, %arg3: memref<1xi32, #tpu.memory_space<smem>>, %arg4: memref<128x128xf32, #tpu.memory_space<vmem>>, %arg5: memref<128x32xf32, #tpu.memory_space<vmem>>, %arg6: memref<32x128xf32, #tpu.memory_space<vmem>>, %arg7: memref<1x128xf32, #tpu.memory_space<vmem>>, %arg8: memref<128x128xf32, #tpu.memory_space<vmem>>, %arg9: memref<128x128xf32, #tpu.memory_space<vmem>>) attributes {dimension_semantics = [#tpu.dimension_semantics<parallel>, #tpu.dimension_semantics<arbitrary>], iteration_bounds = array<i64: 1, 1>, scalar_prefetch = 2 : i64, scratch_operands = 1 : i64, tpu.core_type = #tpu.core_type<tc>, window_params = [{transform_indices = @transform_0, window_bounds = array<i64: 128, 128>}, {transform_indices = @transform_1, window_bounds = array<i64: 128, 32>}, {pipeline_mode = #tpu.pipeline_mode<synchronous>, transform_indices = @transform_2, window_bounds = array<i64: 32, 128>}, {pipeline_mode = #tpu.pipeline_mode<synchronous>, transform_indices = @transform_3, window_bounds = array<i64: 1, 128>}, {transform_indices = @transform_4, window_bounds = array<i64: 128, 128>}]} {
    %c0_i32 = arith.constant 0 : i32
    %0 = arith.cmpi eq, %arg1, %c0_i32 : i32
    %1 = arith.extui %0 : i1 to i32
    %c0_i32_0 = arith.constant 0 : i32
    %2 = arith.cmpi ne, %1, %c0_i32_0 : i32
    scf.if %2 {
      %cst = arith.constant 0.000000e+00 : f32
      %11 = vector.broadcast %cst : f32 to vector<128x128xf32>
      %c0 = arith.constant 0 : index
      %c0_4 = arith.constant 0 : index
      %12 = vector.load %arg9[%c0, %c0_4] : memref<128x128xf32, #tpu.memory_space<vmem>>, vector<128x128xf32>
      tpu.vector_store %arg9[%c0, %c0_4], %11 {strides = array<i32>} : memref<128x128xf32, #tpu.memory_space<vmem>>, vector<128x128xf32>,
    } else {
    }
    %3 = arith.index_cast %arg0 : i32 to index
    %4 = memref.load %arg3[%3] : memref<1xi32, #tpu.memory_space<smem>>
    %5 = arith.cmpi slt, %arg1, %4 : i32
    %6 = arith.extui %5 : i1 to i32
    %c0_i32_1 = arith.constant 0 : i32
    %7 = arith.cmpi ne, %6, %c0_i32_1 : i32
    scf.if %7 {
      %c0 = arith.constant 0 : index
      %c0_4 = arith.constant 0 : index
      %11 = vector.load %arg5[%c0, %c0_4] : memref<128x32xf32, #tpu.memory_space<vmem>>, vector<128x32xf32>
      %c0_5 = arith.constant 0 : index
      %c0_6 = arith.constant 0 : index
      %12 = vector.load %arg6[%c0_5, %c0_6] : memref<32x128xf32, #tpu.memory_space<vmem>>, vector<32x128xf32>
      %cst = arith.constant dense<0.000000e+00> : vector<128x128xf32>
      %13 = tpu.matmul %11, %12, %cst {dimension_numbers = #tpu.dot_dimension_numbers<[1], [0], [0], [1], [0, 0, 1, 1], [], []>} : vector<128x32xf32>, vector<32x128xf32>, vector<128x128xf32> -> vector<128x128xf32>
      %c0_7 = arith.constant 0 : index
      %c0_8 = arith.constant 0 : index
      %14 = vector.load %arg9[%c0_7, %c0_8] : memref<128x128xf32, #tpu.memory_space<vmem>>, vector<128x128xf32>
      %c0_9 = arith.constant 0 : index
      %c0_10 = arith.constant 0 : index
      %15 = vector.load %arg4[%c0_9, %c0_10] : memref<128x128xf32, #tpu.memory_space<vmem>>, vector<128x128xf32>
      %cst_11 = arith.constant dense<0.000000e+00> : vector<128x128xf32>
      %16 = tpu.matmul %15, %13, %cst_11 {dimension_numbers = #tpu.dot_dimension_numbers<[1], [0], [0], [1], [0, 0, 1, 1], [], []>} : vector<128x128xf32>, vector<128x128xf32>, vector<128x128xf32> -> vector<128x128xf32>
      %17 = arith.addf %14, %16 : vector<128x128xf32>
      %c0_12 = arith.constant 0 : index
      %c0_13 = arith.constant 0 : index
      %18 = vector.load %arg9[%c0_12, %c0_13] : memref<128x128xf32, #tpu.memory_space<vmem>>, vector<128x128xf32>
      tpu.vector_store %arg9[%c0_12, %c0_13], %17 {strides = array<i32>} : memref<128x128xf32, #tpu.memory_space<vmem>>, vector<128x128xf32>,
    } else {
    }
    %c0_i32_2 = arith.constant 0 : i32
    %8 = arith.cmpi eq, %arg1, %c0_i32_2 : i32
    %9 = arith.extui %8 : i1 to i32
    %c0_i32_3 = arith.constant 0 : i32
    %10 = arith.cmpi ne, %9, %c0_i32_3 : i32
    scf.if %10 {
      %c0 = arith.constant 0 : index
      %c0_4 = arith.constant 0 : index
      %11 = vector.load %arg9[%c0, %c0_4] : memref<128x128xf32, #tpu.memory_space<vmem>>, vector<128x128xf32>
      %c0_5 = arith.constant 0 : index
      %c0_6 = arith.constant 0 : index
      %12 = vector.load %arg7[%c0_5, %c0_6] : memref<1x128xf32, #tpu.memory_space<vmem>>, vector<1x128xf32>
      %13 = vector.broadcast %12 : vector<1x128xf32> to vector<128x128xf32>
      %14 = arith.addf %11, %13 : vector<128x128xf32>
      %c0_7 = arith.constant 0 : index
      %c0_8 = arith.constant 0 : index
      %15 = vector.load %arg8[%c0_7, %c0_8] : memref<128x128xf32, #tpu.memory_space<vmem>>, vector<128x128xf32>
      tpu.vector_store %arg8[%c0_7, %c0_8], %14 {strides = array<i32>} : memref<128x128xf32, #tpu.memory_space<vmem>>, vector<128x128xf32>,
    } else {
    }
    return
  }
  func.func @transform_0(%arg0: i32, %arg1: i32, %arg2: memref<1xi32, #tpu.memory_space<smem>>, %arg3: memref<1xi32, #tpu.memory_space<smem>>) -> (i32, i32) {
    %c1_i32 = arith.constant 1 : i32
    %0 = arith.muli %arg0, %c1_i32 : i32
    %1 = arith.addi %0, %arg1 : i32
    %2 = arith.index_cast %1 : i32 to index
    %3 = memref.load %arg2[%2] : memref<1xi32, #tpu.memory_space<smem>>
    %c0_i32 = arith.constant 0 : i32
    return %arg0, %3 : i32, i32
  }
  func.func @transform_1(%arg0: i32, %arg1: i32, %arg2: memref<1xi32, #tpu.memory_space<smem>>, %arg3: memref<1xi32, #tpu.memory_space<smem>>) -> (i32, i32) {
    %c1_i32 = arith.constant 1 : i32
    %0 = arith.muli %arg0, %c1_i32 : i32
    %1 = arith.addi %0, %arg1 : i32
    %2 = arith.index_cast %1 : i32 to index
    %3 = memref.load %arg2[%2] : memref<1xi32, #tpu.memory_space<smem>>
    %c0_i32 = arith.constant 0 : i32
    %c0_i32_0 = arith.constant 0 : i32
    return %3, %c0_i32 : i32, i32
  }
  func.func @transform_2(%arg0: i32, %arg1: i32, %arg2: memref<1xi32, #tpu.memory_space<smem>>, %arg3: memref<1xi32, #tpu.memory_space<smem>>) -> (i32, i32) {
    %c0_i32 = arith.constant 0 : i32
    %c0_i32_0 = arith.constant 0 : i32
    %c0_i32_1 = arith.constant 0 : i32
    return %c0_i32, %c0_i32_0 : i32, i32
  }
  func.func @transform_3(%arg0: i32, %arg1: i32, %arg2: memref<1xi32, #tpu.memory_space<smem>>, %arg3: memref<1xi32, #tpu.memory_space<smem>>) -> (i32, i32) {
    %c0_i32 = arith.constant 0 : i32
    %c0_i32_0 = arith.constant 0 : i32
    %c0_i32_1 = arith.constant 0 : i32
    return %c0_i32, %c0_i32_0 : i32, i32
  }
  func.func @transform_4(%arg0: i32, %arg1: i32, %arg2: memref<1xi32, #tpu.memory_space<smem>>, %arg3: memref<1xi32, #tpu.memory_space<smem>>) -> (i32, i32) {
    %c0_i32 = arith.constant 0 : i32
    %c0_i32_0 = arith.constant 0 : i32
    return %arg0, %c0_i32 : i32, i32
  }
}

</mosaic_0001>

<bundles_post_ra>
// kernel: tpu_custom_call.1
= control target key start
LH: loop header
LB: loop body
LE: loop exit
PB: predicated region body
PF: predicated region fallthrough
CT: control target
= control target key end

     0   :  { %13 = vsyncpa [#allocation7], 0  ;;  %v851_v0 = vmov 0.0   ;;  %s997_s0 = inlined_call_operand.<no memory space> [shape: s32[1], index: 0, kind: input, shape index: {}]   ;;  %s998_s1 = inlined_call_operand.<no memory space> [shape: s32[1], index: 1, kind: input, shape index: {}]   ;;  %s999_s2 = inlined_call_operand.vmem [shape: f32[128,128], index: 2, kind: input, shape index: {}]   ;;  %s1000_s3 = inlined_call_operand.vmem [shape: f32[128,32], index: 3, kind: input, shape index: {}]   ;;  %s1001_s4 = inlined_call_operand.vmem [shape: f32[32,128], index: 4, kind: input, shape index: {}]   ;;  %s1002_s5 = inlined_call_operand.vmem [shape: f32[1,128], index: 5, kind: input, shape index: {}]   ;;  %s1003_s6 = inlined_call_operand.hbm [shape: f32[128,128], index: 6, kind: output, shape index: {}]  }
   0x1   :  { %p55_p0 = scmp.lt.s32.totalorder %s997_s0, 0  ;;  %s606_s25 = sshll.u32 %s997_s0, 4  ;;  %75 = vst [vmem:[#allocation2] sm:$0xff] %v851_v0  ;;  %76 = vst [vmem:[#allocation2 + $0x8] sm:$0xff] %v851_v0 }
   0x2   :  { %p896_p1 = scmp.lt.s32.totalorder %s606_s25, 15  ;;  %77 = vst [vmem:[#allocation2 + $0x10] sm:$0xff] %v851_v0  ;;  %78 = vst [vmem:[#allocation2 + $0x18] sm:$0xff] %v851_v0  ;;  %p609_p2 = scmp.le.s32.totalorder %s998_s1, 0 }
   0x3   :  { %79 = vst [vmem:[#allocation2 + $0x20] sm:$0xff] %v851_v0  ;;  %80 = vst [vmem:[#allocation2 + $0x28] sm:$0xff] %v851_v0  ;;  %s1006_s0 = smov (!%p55_p0, %s997_s0), 0  ;;  %v112_v1 = vld [vmem:[%s1001_s4] sm:$0xff] (!%p609_p2)  ;;  %v113_v2 = vld [vmem:[%s1001_s4 + $0x8] sm:$0xff] (!%p609_p2)  ;;  %vm116_vm0 = vcmask (!%p609_p2), 261120  }
   0x4   :  { %81 = vst [vmem:[#allocation2 + $0x30] sm:$0xff] %v851_v0  ;;  %82 = vst [vmem:[#allocation2 + $0x38] sm:$0xff] %v851_v0  ;;  %s1008_s25 = smov (!%p896_p1, %s606_s25), 15  ;;  %s605_s7 = sshll.u32 %s1006_s0, 3  ;;  %v114_v3 = vld [vmem:[%s1001_s4 + $0x10] sm:$0xff] (!%p609_p2)  ;;  %v767_v4 = vpack.c.bf16 (!%p609_p2), %v113_v2, %v112_v1  ;;  %v115_v5 = vld [vmem:[%s1001_s4 + $0x18] sm:$0xff] (!%p609_p2) }
   0x5   :  { %83 = vst [vmem:[#allocation2 + $0x40] sm:$0xff] %v851_v0  ;;  %84 = vst [vmem:[#allocation2 + $0x48] sm:$0xff] %v851_v0  ;;  %s912_s10 = scalar_lea.vmem %s999_s2, %s605_s7  ;;  %s607_s11 = sshll.u32 %s1008_s25, 3  ;;  %v771_v7 = vpack.c.bf16 (!%p609_p2), %v115_v5, %v114_v3 }
   0x6   :  { %85 = vst [vmem:[#allocation2 + $0x50] sm:$0xff] %v851_v0  ;;  %86 = vst [vmem:[#allocation2 + $0x58] sm:$0xff] %v851_v0  ;;  %s917_s14 = scalar_lea.vmem %s1000_s3, %s607_s11  ;;  %95 = sbr.rel (%p609_p2) target bundleno = 493 (0x1ed), region = 25  ;;  %768 = vmatprep.subr.bf16.mxu0 (!%p609_p2), %v767_v4  ;;  %v332_v23 = vld [vmem:[%s912_s10 + $0x30] sm:$0xff] (!%p609_p2)  ;;  %v326_v24 = vld [vmem:[%s912_s10] sm:$0xff] (!%p609_p2) }
   0x7   :  { %87 = vst [vmem:[#allocation2 + $0x60] sm:$0xff] %v851_v0  ;;  %88 = vst [vmem:[#allocation2 + $0x68] sm:$0xff] %v851_v0  ;;  %v96_v6 = vld [vmem:[%s917_s14] sm:$0xff] (!%p609_p2)  ;;  %770 = vmatpush3.bf16.msra.mxu0 (!%p609_p2), %v767_v4  ;;  %v97_v8 = vld [vmem:[%s917_s14 + $0x8] sm:$0xff] (!%p609_p2)  ;;  %752 = vmatprep.mubr.f32.mxu1 (!%p609_p2), %v332_v23 }
   0x8   :  { %89 = vst [vmem:[#allocation2 + $0x70] sm:$0xff] %v851_v0  ;;  %90 = vst [vmem:[#allocation2 + $0x78] sm:$0xff] %v851_v0  ;;  %687 = vmatprep.mubr.msk.f32.mxu0 (!%p609_p2), %vm116_vm0, %v96_v6  ;;  %772 = vmatprep.subr.bf16.mxu0 (!%p609_p2), %v771_v7  ;;  %v98_v9 = vld [vmem:[%s917_s14 + $0x10] sm:$0xff] (!%p609_p2)  ;;  %v99_v10 = vld [vmem:[%s917_s14 + $0x18] sm:$0xff] (!%p609_p2) }
   0x9   :  { %v100_v11 = vld [vmem:[%s917_s14 + $0x20] sm:$0xff] (!%p609_p2)  ;;  %v101_v12 = vld [vmem:[%s917_s14 + $0x28] sm:$0xff] (!%p609_p2)  ;;  %v102_v13 = vld [vmem:[%s917_s14 + $0x30] sm:$0xff] (!%p609_p2) }
   0xa   :  { %v103_v14 = vld [vmem:[%s917_s14 + $0x38] sm:$0xff] (!%p609_p2)  ;;  %v104_v15 = vld [vmem:[%s917_s14 + $0x40] sm:$0xff] (!%p609_p2)  ;;  %v105_v16 = vld [vmem:[%s917_s14 + $0x48] sm:$0xff] (!%p609_p2) }
   0xb   :  { %774 = vmatpush3.bf16.msra.mxu0 (!%p609_p2), %v771_v7  ;;  %v106_v17 = vld [vmem:[%s917_s14 + $0x50] sm:$0xff] (!%p609_p2)  ;;  %v107_v18 = vld [vmem:[%s917_s14 + $0x58] sm:$0xff] (!%p609_p2)  ;;  %v108_v19 = vld [vmem:[%s917_s14 + $0x60] sm:$0xff] (!%p609_p2) }
   0xc   :  { %v109_v20 = vld [vmem:[%s917_s14 + $0x68] sm:$0xff] (!%p609_p2)  ;;  %v110_v21 = vld [vmem:[%s917_s14 + $0x70] sm:$0xff] (!%p609_p2)  ;;  %v111_v22 = vld [vmem:[%s917_s14 + $0x78] sm:$0xff] (!%p609_p2) }
   0xd   :  { %v333_v49 = vld [vmem:[%s912_s10 + $0x38] sm:$0xff]  ;;  %v327_v50 = vld [vmem:[%s912_s10 + $0x8] sm:$0xff]  ;;  %v334_v51 = vld [vmem:[%s912_s10 + $0x40] sm:$0xff] }
   0xe   :  { %688 = vmatmul.mubr.msk.f32.vlgmr.msra.gmra.mrb[0].mxu0 %vm116_vm0, %v97_v8  ;;  %v328_v52 = vld [vmem:[%s912_s10 + $0x10] sm:$0xff]  ;;  %v335_v53 = vld [vmem:[%s912_s10 + $0x48] sm:$0xff]  ;;  %v329_v54 = vld [vmem:[%s912_s10 + $0x18] sm:$0xff] }
   0xf   :  { %690 = vmatprep.mubr.msk.f32.mxu0 %vm116_vm0, %v98_v9  ;;  %v336_v55 = vld [vmem:[%s912_s10 + $0x50] sm:$0xff]  ;;  %v330_v56 = vld [vmem:[%s912_s10 + $0x20] sm:$0xff]  ;;  %v337_v57 = vld [vmem:[%s912_s10 + $0x58] sm:$0xff] }
  0x10   :  { %v331_v58 = vld [vmem:[%s912_s10 + $0x28] sm:$0xff]  ;;  %v338_v59 = vld [vmem:[%s912_s10 + $0x60] sm:$0xff]  ;;  %v340_v61 = vld [vmem:[%s912_s10 + $0x70] sm:$0xff] }
  0x11   :  { %v339_v60 = vld [vmem:[%s912_s10 + $0x68] sm:$0xff]  ;;  %v341_v62 = vld [vmem:[%s912_s10 + $0x78] sm:$0xff]  ;;  %v316_v1 = vld [vmem:[#allocation2 + $0x30] sm:$0xff] }
  0x12   :  { %691 = vmatmul.mubr.msk.f32.gmra.mrb[2].mxu0 %vm116_vm0, %v99_v10  ;;  %v317_v63 = vld [vmem:[#allocation2 + $0x38] sm:$0xff]  ;;  %v311_v0 = vld [vmem:[#allocation2 + $0x8] sm:$0xff]  ;;  %v310_v2 = vld [vmem:[#allocation2] sm:$0xff] }
  0x13   :  { %693 = vmatprep.mubr.msk.f32.mxu0 %vm116_vm0, %v100_v11  ;;  %v319_v10 = vld [vmem:[#allocation2 + $0x48] sm:$0xff] }
  0x16   :  { %694 = vmatmul.mubr.msk.f32.gmra.mrb[4].mxu0 %vm116_vm0, %v101_v12  ;;  %v313_v12 = vld [vmem:[#allocation2 + $0x18] sm:$0xff] }
  0x17   :  { %696 = vmatprep.mubr.msk.f32.mxu0 %vm116_vm0, %v102_v13  ;;  %v318_v13 = vld [vmem:[#allocation2 + $0x40] sm:$0xff] }
  0x1a   :  { %697 = vmatmul.mubr.msk.f32.gmra.mrb[6].mxu0 %vm116_vm0, %v103_v14  ;;  %v312_v14 = vld [vmem:[#allocation2 + $0x10] sm:$0xff] }
  0x1b   :  { %699 = vmatprep.mubr.msk.f32.mxu0 %vm116_vm0, %v104_v15 }
  0x1e   :  { %700 = vmatmul.mubr.msk.f32.gmra.mrb[8].mxu0 %vm116_vm0, %v105_v16 }
  0x1f   :  { %702 = vmatprep.mubr.msk.f32.mxu0 %vm116_vm0, %v106_v17 }
  0x22   :  { %703 = vmatmul.mubr.msk.f32.gmra.mrb[10].mxu0 %vm116_vm0, %v107_v18 }
  0x23   :  { %705 = vmatprep.mubr.msk.f32.mxu0 %vm116_vm0, %v108_v19 }
  0x26   :  { %706 = vmatmul.mubr.msk.f32.gmra.mrb[12].mxu0 %vm116_vm0, %v109_v20 }
  0x27   :  { %708 = vmatprep.mubr.msk.f32.mxu0 %vm116_vm0, %v110_v21 }
  0x2a   :  { %709 = vmatmul.mubr.msk.f32.gmra.mrb[14].mxu0 %vm116_vm0, %v111_v22  ;;  %v321_v22 = vld [vmem:[#allocation2 + $0x58] sm:$0xff] }
  0x2b   :  { %743 = vmatprep.mubr.f32.mxu0 %v326_v24  ;;  %v315_v24 = vld [vmem:[#allocation2 + $0x28] sm:$0xff] }
  0xe1   :  { %v689_v25 = vpop.f32.mrb[0].mxu0 }
  0xe2   :  { %v231_v26 = vpop.f32.mrb[1].mxu0 }
  0xe3   :  { %v775_v27 = vpack.c.bf16 %v689_v25, %v231_v26  ;;  %v320_v25 = vld [vmem:[#allocation2 + $0x50] sm:$0xff]  ;;  %v314_v26 = vld [vmem:[#allocation2 + $0x20] sm:$0xff] }
  0xe5   :  { %v692_v28 = vpop.f32.mrb[2].mxu0  ;;  %776 = vmatprep.subr.bf16.mxu0 %v775_v27  ;;  %807 = vmatprep.subr.bf16.mxu1 %v775_v27 }
  0xe6   :  { %v241_v29 = vpop.f32.mrb[3].mxu0  ;;  %778 = vmatpush3.bf16.msra.mxu0 %v775_v27  ;;  %815 = vmatpush3.bf16.msra.mxu1 %v775_v27 }
  0xe7   :  { %v779_v30 = vpack.c.bf16 %v692_v28, %v241_v29 }
  0xe9   :  { %v695_v31 = vpop.f32.mrb[4].mxu0  ;;  %780 = vmatprep.subr.bf16.mxu0 %v779_v30  ;;  %808 = vmatprep.subr.bf16.mxu1 %v779_v30 }
  0xea   :  { %v251_v32 = vpop.f32.mrb[5].mxu0  ;;  %782 = vmatpush3.bf16.msra.mxu0 %v779_v30  ;;  %816 = vmatpush3.bf16.msra.mxu1 %v779_v30 }
  0xeb   :  { %v783_v33 = vpack.c.bf16 %v695_v31, %v251_v32 }
  0xed   :  { %v698_v34 = vpop.f32.mrb[6].mxu0  ;;  %784 = vmatprep.subr.bf16.mxu0 %v783_v33  ;;  %809 = vmatprep.subr.bf16.mxu1 %v783_v33 }
  0xee   :  { %v261_v35 = vpop.f32.mrb[7].mxu0  ;;  %786 = vmatpush3.bf16.msra.mxu0 %v783_v33  ;;  %817 = vmatpush3.bf16.msra.mxu1 %v783_v33 }
  0xef   :  { %v787_v36 = vpack.c.bf16 %v698_v34, %v261_v35  ;;  %v323_v34 = vld [vmem:[#allocation2 + $0x68] sm:$0xff] }
  0xf1   :  { %v701_v37 = vpop.f32.mrb[8].mxu0  ;;  %788 = vmatprep.subr.bf16.mxu0 %v787_v36  ;;  %810 = vmatprep.subr.bf16.mxu1 %v787_v36 }
  0xf2   :  { %v271_v38 = vpop.f32.mrb[9].mxu0  ;;  %790 = vmatpush3.bf16.msra.mxu0 %v787_v36  ;;  %818 = vmatpush3.bf16.msra.mxu1 %v787_v36  ;;  %v322_v36 = vld [vmem:[#allocation2 + $0x60] sm:$0xff] }
  0xf3   :  { %v791_v39 = vpack.c.bf16 %v701_v37, %v271_v38 }
  0xf5   :  { %v704_v40 = vpop.f32.mrb[10].mxu0  ;;  %792 = vmatprep.subr.bf16.mxu0 %v791_v39  ;;  %811 = vmatprep.subr.bf16.mxu1 %v791_v39 }
  0xf6   :  { %v281_v41 = vpop.f32.mrb[11].mxu0  ;;  %794 = vmatpush3.bf16.msra.mxu0 %v791_v39  ;;  %819 = vmatpush3.bf16.msra.mxu1 %v791_v39 }
  0xf7   :  { %v795_v42 = vpack.c.bf16 %v704_v40, %v281_v41  ;;  %v325_v41 = vld [vmem:[#allocation2 + $0x78] sm:$0xff] }
  0xf9   :  { %v707_v43 = vpop.f32.mrb[12].mxu0  ;;  %796 = vmatprep.subr.bf16.mxu0 %v795_v42  ;;  %812 = vmatprep.subr.bf16.mxu1 %v795_v42 }
  0xfa   :  { %v291_v44 = vpop.f32.mrb[13].mxu0  ;;  %798 = vmatpush3.bf16.msra.mxu0 %v795_v42  ;;  %820 = vmatpush3.bf16.msra.mxu1 %v795_v42  ;;  %v324_v42 = vld [vmem:[#allocation2 + $0x70] sm:$0xff] }
  0xfb   :  { %v799_v45 = vpack.c.bf16 %v707_v43, %v291_v44 }
  0xfd   :  { %v710_v46 = vpop.f32.mrb[14].mxu0  ;;  %800 = vmatprep.subr.bf16.mxu0 %v799_v45  ;;  %813 = vmatprep.subr.bf16.mxu1 %v799_v45 }
  0xfe   :  { %v301_v47 = vpop.f32.mrb[15].mxu0  ;;  %802 = vmatpush3.bf16.msra.mxu0 %v799_v45  ;;  %821 = vmatpush3.bf16.msra.mxu1 %v799_v45 }
  0xff   :  { %v803_v48 = vpack.c.bf16 %v710_v46, %v301_v47 }
 0x101   :  { %804 = vmatprep.subr.bf16.mxu0 %v803_v48  ;;  %814 = vmatprep.subr.bf16.mxu1 %v803_v48 }
 0x102   :  { %806 = vmatpush3.bf16.msra.mxu0 %v803_v48  ;;  %822 = vmatpush3.bf16.msra.mxu1 %v803_v48 }
 0x105   :  { %753 = vmatmul.mubr.f32.vlgmr.msra.gmra.mrb[0].mxu1 %v333_v49  ;;  %744 = vmatmul.mubr.f32.vlgmr.msra.gmra.mrb[16].mxu0 %v327_v50 }
 0x106   :  { %755 = vmatprep.mubr.f32.mxu1 %v334_v51  ;;  %746 = vmatprep.mubr.f32.mxu0 %v328_v52 }
 0x109   :  { %756 = vmatmul.mubr.f32.gmra.mrb[2].mxu1 %v335_v53  ;;  %747 = vmatmul.mubr.f32.gmra.mrb[18].mxu0 %v329_v54 }
 0x10a   :  { %758 = vmatprep.mubr.f32.mxu1 %v336_v55  ;;  %749 = vmatprep.mubr.f32.mxu0 %v330_v56 }
 0x10d   :  { %759 = vmatmul.mubr.f32.gmra.mrb[4].mxu1 %v337_v57  ;;  %750 = vmatmul.mubr.f32.gmra.mrb[20].mxu0 %v331_v58 }
 0x10e   :  { %761 = vmatprep.mubr.f32.mxu1 %v338_v59 }
 0x111   :  { %762 = vmatmul.mubr.f32.gmra.mrb[6].mxu1 %v339_v60 }
 0x112   :  { %764 = vmatprep.mubr.f32.mxu1 %v340_v61 }
 0x115   :  { %765 = vmatmul.mubr.f32.gmra.mrb[8].mxu1 %v341_v62 }
 0x1d8   :  { %v754_v3 = vpop.f32.mrb[0].mxu1  ;;  %v745_v4 = vpop.f32.mrb[16].mxu0 }
 0x1d9   :  { %v494_v5 = vadd.f32 %v754_v3, %v317_v63  ;;  %v438_v6 = vpop.f32.mrb[1].mxu1  ;;  %v488_v7 = vadd.f32 %v745_v4, %v311_v0  ;;  %v408_v8 = vpop.f32.mrb[17].mxu0 }
 0x1da   :  { %v493_v9 = vadd.f32 %v438_v6, %v316_v1  ;;  %v487_v11 = vadd.f32 %v408_v8, %v310_v2 }
 0x1db   :  { %510 = vst [vmem:[#allocation2 + $0x38] sm:$0xff] %v494_v5  ;;  %504 = vst [vmem:[#allocation2 + $0x8] sm:$0xff] %v488_v7 }
 0x1dc   :  { %509 = vst [vmem:[#allocation2 + $0x30] sm:$0xff] %v493_v9  ;;  %v757_v15 = vpop.f32.mrb[2].mxu1  ;;  %503 = vst [vmem:[#allocation2] sm:$0xff] %v487_v11  ;;  %v748_v16 = vpop.f32.mrb[18].mxu0 }
 0x1dd   :  { %v496_v17 = vadd.f32 %v757_v15, %v319_v10  ;;  %v448_v18 = vpop.f32.mrb[3].mxu1  ;;  %v490_v19 = vadd.f32 %v748_v16, %v313_v12  ;;  %v418_v20 = vpop.f32.mrb[19].mxu0 }
 0x1de   :  { %v495_v21 = vadd.f32 %v448_v18, %v318_v13  ;;  %v489_v23 = vadd.f32 %v418_v20, %v312_v14 }
 0x1df   :  { %512 = vst [vmem:[#allocation2 + $0x48] sm:$0xff] %v496_v17  ;;  %506 = vst [vmem:[#allocation2 + $0x18] sm:$0xff] %v490_v19 }
 0x1e0   :  { %511 = vst [vmem:[#allocation2 + $0x40] sm:$0xff] %v495_v21  ;;  %v760_v27 = vpop.f32.mrb[4].mxu1  ;;  %505 = vst [vmem:[#allocation2 + $0x10] sm:$0xff] %v489_v23  ;;  %v751_v28 = vpop.f32.mrb[20].mxu0 }
 0x1e1   :  { %v498_v29 = vadd.f32 %v760_v27, %v321_v22  ;;  %v458_v30 = vpop.f32.mrb[5].mxu1  ;;  %v492_v31 = vadd.f32 %v751_v28, %v315_v24  ;;  %v428_v32 = vpop.f32.mrb[21].mxu0 }
 0x1e2   :  { %v497_v33 = vadd.f32 %v458_v30, %v320_v25  ;;  %v491_v35 = vadd.f32 %v428_v32, %v314_v26 }
 0x1e3   :  { %514 = vst [vmem:[#allocation2 + $0x58] sm:$0xff] %v498_v29  ;;  %508 = vst [vmem:[#allocation2 + $0x28] sm:$0xff] %v492_v31 }
 0x1e4   :  { %513 = vst [vmem:[#allocation2 + $0x50] sm:$0xff] %v497_v33  ;;  %v763_v37 = vpop.f32.mrb[6].mxu1  ;;  %507 = vst [vmem:[#allocation2 + $0x20] sm:$0xff] %v491_v35 }
 0x1e5   :  { %v500_v38 = vadd.f32 %v763_v37, %v323_v34  ;;  %v468_v39 = vpop.f32.mrb[7].mxu1 }
 0x1e6   :  { %v499_v40 = vadd.f32 %v468_v39, %v322_v36 }
 0x1e7   :  { %516 = vst [vmem:[#allocation2 + $0x68] sm:$0xff] %v500_v38 }
 0x1e8   :  { %515 = vst [vmem:[#allocation2 + $0x60] sm:$0xff] %v499_v40  ;;  %v766_v43 = vpop.f32.mrb[8].mxu1 }
 0x1e9   :  { %v502_v44 = vadd.f32 %v766_v43, %v325_v41  ;;  %v478_v45 = vpop.f32.mrb[9].mxu1 }
 0x1ea   :  { %v501_v46 = vadd.f32 %v478_v45, %v324_v42 }
 0x1eb   :  { %518 = vst [vmem:[#allocation2 + $0x78] sm:$0xff] %v502_v44 }
 0x1ec   :  { %517 = vst [vmem:[#allocation2 + $0x70] sm:$0xff] %v501_v46 }
 0x1ed PF:  { %v522_v47 = vld [vmem:[#allocation2] sm:$0xff]  ;;  %v523_v49 = vld [vmem:[#allocation2 + $0x8] sm:$0xff]  ;;  %v524_v52 = vld [vmem:[#allocation2 + $0x10] sm:$0xff] }
 0x1ee   :  { %v626_v48 = vld [vmem:[%s1002_s5] ss:$0 sm:$0xff]  ;;  %v525_v53 = vld [vmem:[#allocation2 + $0x18] sm:$0xff]  ;;  %v527_v58 = vld [vmem:[#allocation2 + $0x28] sm:$0xff]  ;;  %s852_s5 = smov [#allocation6]  }
 0x1ef   :  { %v545_v50 = vadd.f32 %v626_v48, %v522_v47  ;;  %v546_v51 = vadd.f32 %v626_v48, %v523_v49  ;;  %v526_v54 = vld [vmem:[#allocation2 + $0x20] sm:$0xff]  ;;  %v547_v55 = vadd.f32 %v626_v48, %v524_v52  ;;  %v548_v56 = vadd.f32 %v626_v48, %v525_v53  ;;  %v528_v59 = vld [vmem:[#allocation2 + $0x30] sm:$0xff]  ;;  %v529_v60 = vld [vmem:[#allocation2 + $0x38] sm:$0xff]  ;;  %s582_s22 = sshll.u32 %s852_s5, 4  ;;  %s583_s22 = int_to_ptr.vmem [resolvable:$true] %s582_s22 }
 0x1f0   :  { %v549_v57 = vadd.f32 %v626_v48, %v526_v54  ;;  %v550_v61 = vadd.f32 %v626_v48, %v527_v58  ;;  %v551_v62 = vadd.f32 %v626_v48, %v528_v59  ;;  %v552_v63 = vadd.f32 %v626_v48, %v529_v60  ;;  %v530_v0 = vld [vmem:[#allocation2 + $0x40] sm:$0xff]  ;;  %v531_v1 = vld [vmem:[#allocation2 + $0x48] sm:$0xff]  ;;  %v532_v2 = vld [vmem:[#allocation2 + $0x50] sm:$0xff]  ;;  %s827_s23 = scalar_lea.vmem %s583_s22, 2048  ;;  %p832_p4 = scmp.lt.s32.totalorder %s583_s22, %s583_s22 }
 0x1f1   :  { %561 = vst [vmem:[#allocation6] sm:$0xff] %v545_v50  ;;  %562 = vst [vmem:[#allocation6 + $0x8] sm:$0xff] %v546_v51  ;;  %v553_v3 = vadd.f32 %v626_v48, %v530_v0  ;;  %v554_v4 = vadd.f32 %v626_v48, %v531_v1  ;;  %v555_v5 = vadd.f32 %v626_v48, %v532_v2  ;;  %v533_v6 = vld [vmem:[#allocation2 + $0x58] sm:$0xff]  ;;  %v534_v7 = vld [vmem:[#allocation2 + $0x60] sm:$0xff]  ;;  %p828_p3 = scmp.ne.s32.totalorder %s583_s22, %s827_s23  ;;  %p833_p5 = scmp.lt.s32.totalorder %s827_s23, %s827_s23 }
 0x1f2   :  { %563 = vst [vmem:[#allocation6 + $0x10] sm:$0xff] %v547_v55  ;;  %564 = vst [vmem:[#allocation6 + $0x18] sm:$0xff] %v548_v56  ;;  %v535_v8 = vld [vmem:[#allocation2 + $0x68] sm:$0xff]  ;;  %v556_v9 = vadd.f32 %v626_v48, %v533_v6  ;;  %v557_v10 = vadd.f32 %v626_v48, %v534_v7  ;;  %v537_v13 = vld [vmem:[#allocation2 + $0x78] sm:$0xff] }
 0x1f3   :  { %565 = vst [vmem:[#allocation6 + $0x20] sm:$0xff] %v549_v57  ;;  %566 = vst [vmem:[#allocation6 + $0x28] sm:$0xff] %v550_v61  ;;  %v558_v11 = vadd.f32 %v626_v48, %v535_v8  ;;  %v536_v12 = vld [vmem:[#allocation2 + $0x70] sm:$0xff]  ;;  %v560_v15 = vadd.f32 %v626_v48, %v537_v13  ;;  %p834_p6 = por %p833_p5, %p832_p4 }
 0x1f4   :  { %567 = vst [vmem:[#allocation6 + $0x30] sm:$0xff] %v551_v62  ;;  %568 = vst [vmem:[#allocation6 + $0x38] sm:$0xff] %v552_v63  ;;  %v559_v14 = vadd.f32 %v626_v48, %v536_v12 }
 0x1f5   :  { %569 = vst [vmem:[#allocation6 + $0x40] sm:$0xff] %v553_v3  ;;  %570 = vst [vmem:[#allocation6 + $0x48] sm:$0xff] %v554_v4  ;;  %p835_p7 = pnand %p834_p6, %p828_p3 }
 0x1f6   :  { %571 = vst [vmem:[#allocation6 + $0x50] sm:$0xff] %v555_v5  ;;  %572 = vst [vmem:[#allocation6 + $0x58] sm:$0xff] %v556_v9 }
 0x1f7   :  { %573 = vst [vmem:[#allocation6 + $0x60] sm:$0xff] %v557_v10  ;;  %574 = vst [vmem:[#allocation6 + $0x68] sm:$0xff] %v558_v11 }
 0x1f8   :  { %575 = vst [vmem:[#allocation6 + $0x70] sm:$0xff] %v559_v14  ;;  %576 = vst [vmem:[#allocation6 + $0x78] sm:$0xff] %v560_v15 }
 0x1f9   :  { %838 = shalt.err (!%p835_p7)
}
 0x1fa   :  { %s839_s26 = scalar_lea.hbm %s1003_s6, 2048 }
 0x1fb   :  { %p840_p8 = scmp.ne.s32.totalorder %s1003_s6, %s839_s26  ;;  %p843_p9 = scmp.lt.u32.totalorder %s839_s26, %s1003_s6 }
 0x1fd   :  { %p845_p10 = pnand %p843_p9, %p840_p8 }
 0x1ff   :  { %848 = shalt.err (!%p845_p10)
}
 0x200   :  { %s853_s7 = smov 128   ;;  %s854_s8 = smov 8  }
 0x201   :  { %588 = dma.vmem_to_hbm [thread:$0]  %s583_s22, 2048, %s1003_s6, [#allocation7], %s853_s7, %s853_s7, %s854_s8  }
 0x202   :  { %849 = dma.done.wait [#allocation7], 2048  }
 0x203   :  { %850 = vsyncadd [#allocation7], 4294965248 }
 0x204   :  { %592 = vsyncpa [#allocation7], 1 }

</bundles_post_ra>
